<compile_context>
chip_gen: v7x
topology: tpu7x:2x2x1
jax: 0.10.0
libtpu: 0.0.40
codegen_flags: <defaults>
</compile_context>

<pallas_src>
import functools

import jax
import jax.numpy as jnp
import numpy as np
from jax.experimental import pallas as pl
from jax.experimental.pallas import tpu as pltpu


def _round_up(x: int, m: int) -> int:
    return ((x + m - 1) // m) * m


def _partial_loss_kernel(tgt_ref, main_ref, struct_ref, notes_ref, out_ref, *,
                         b_true: int):
    """Per-block partial sums of [NLL(main), CE(struct), CE(notes)].

    Blocks: tgt (TB,1) i32, score tensors (TB, C) in caller dtype,
    out (1,1,128) f32 with lanes 0..2 = the three partial sums.
    """
    i = pl.program_id(0)
    tb, c = main_ref.shape

    col_ids = jax.lax.broadcasted_iota(jnp.int32, (tb, c), 1)
    pick_mask = col_ids == tgt_ref[...]                       # (TB, C)

    # Rows past the true batch size (partial edge block) hold undefined HBM
    # data; they must be dropped with a select (jnp.where), never a
    # mask-multiply (NaN * 0 = NaN).
    row_ids = jax.lax.broadcasted_iota(jnp.int32, (tb, 1), 0)
    row_valid = (i * tb + row_ids) < b_true                   # (TB, 1)

    # ---- main loss: pick-then-log (1 log per row instead of per element) ----
    probs = main_ref[...].astype(jnp.float32)
    picked_p = jnp.sum(jnp.where(pick_mask, probs, 0.0), axis=-1, keepdims=True)
    s_main = jnp.sum(jnp.where(row_valid, -jnp.log(picked_p), 0.0))

    # ---- aux losses: cross entropy = logsumexp(x) - x[target] ---------------
    def ce_partial_sum(ref):
        x = ref[...].astype(jnp.float32)
        m = jnp.max(x, axis=-1, keepdims=True)
        lse = m + jnp.log(jnp.sum(jnp.exp(x - m), axis=-1, keepdims=True))
        picked = jnp.sum(jnp.where(pick_mask, x, 0.0), axis=-1, keepdims=True)
        return jnp.sum(jnp.where(row_valid, lse - picked, 0.0))

    s_aux1 = ce_partial_sum(struct_ref)
    s_aux2 = ce_partial_sum(notes_ref)

    # lane-dense output block: lanes 0..2 carry the partial sums, rest zero
    lane = jax.lax.broadcasted_iota(jnp.int32, (1, 1, 128), 2)
    out_ref[...] = (jnp.where(lane == 0, s_main, 0.0)
                    + jnp.where(lane == 1, s_aux1, 0.0)
                    + jnp.where(lane == 2, s_aux2, 0.0)).astype(jnp.float32)


def _vmem_budget_and_split():
    """Returns (per-step double-buffered VMEM byte budget, want >= 2 blocks)."""
    kind = ""
    try:
        kind = (jax.devices()[0].device_kind or "").lower()
    except Exception:
        pass
    if "v7" in kind:
        return 24 << 20, True    # 64 MiB physical / 32 MiB scoped; 2 TCs/chip
    if "v6" in kind:
        return 22 << 20, False   # 32 MiB scoped default of 128 MiB physical
    if "v5 lite" in kind or "v5e" in kind or "v5lite" in kind:
        return 12 << 20, False   # 16 MiB scoped default
    return 12 << 20, False       # conservative fallback (unknown chip)


def _loss_components(main_probs, structured_logits, notes_logits, targets, *,
                     block_rows=None):
    """Batch-mean (main_loss, aux1, aux2) computed with the Pallas kernel."""
    B, C = main_probs.shape
    budget, want_split = _vmem_budget_and_split()

    # Double-buffered rows of the three score tensors dominate the footprint.
    per_row_bytes = 2 * C * (main_probs.dtype.itemsize
                             + structured_logits.dtype.itemsize
                             + notes_logits.dtype.itemsize) + 2 * 4
    # TODO(synk): for very wide class dims (C >= ~16-32K) add a class-axis
    # grid ("arbitrary") with an online-softmax accumulator instead of
    # shrinking the row tile toward 8.
    if block_rows is None:
        tb = min(4096, max(1, budget // per_row_bytes))
        if want_split and B >= 16:
            # keep >= 2 blocks so the "parallel" batch axis uses both v7x TCs
            tb = min(tb, _round_up(-(-B // 2), 8))
    else:
        tb = int(block_rows)

    if tb >= B:
        tb = B                        # single full block; block dim == array dim
    else:
        tb = max(8, (tb // 8) * 8)    # (8,128) rule: row tile multiple of 8
    num_blocks = -(-B // tb)

    # keep caller dtype for the big tensors (no pad, no upcast); only the tiny
    # targets array is reshaped to a (B,1) int32 column.
    tgt = targets.astype(jnp.int32).reshape(B, 1)

    in_bytes = sum(int(x.size) * x.dtype.itemsize
                   for x in (main_probs, structured_logits, notes_logits))
    cost = pl.CostEstimate(
        flops=12 * B * C,
        transcendentals=2 * B * C + 4 * B,
        bytes_accessed=in_bytes + B * 4 + num_blocks * 128 * 4,
    )

    kernel = functools.partial(_partial_loss_kernel, b_true=B)

    partials = pl.pallas_call(
        kernel,
        out_shape=jax.ShapeDtypeStruct((num_blocks, 1, 128), jnp.float32),
        grid_spec=pltpu.PrefetchScalarGridSpec(
            num_scalar_prefetch=0,
            grid=(num_blocks,),
            in_specs=[
                pl.BlockSpec((tb, 1), lambda i: (i, 0)),
                pl.BlockSpec((tb, C), lambda i: (i, 0)),
                pl.BlockSpec((tb, C), lambda i: (i, 0)),
                pl.BlockSpec((tb, C), lambda i: (i, 0)),
            ],
            out_specs=pl.BlockSpec((1, 1, 128), lambda i: (i, 0, 0)),
        ),
        compiler_params=pltpu.CompilerParams(
            dimension_semantics=("parallel",)),
        cost_estimate=cost,
    )(tgt, main_probs, structured_logits, notes_logits)

    sums = jnp.sum(partials[:, 0, :3], axis=0)   # [sum_main, sum_aux1, sum_aux2]
    inv_b = jnp.float32(1.0 / B)
    return sums[0] * inv_b, sums[1] * inv_b, sums[2] * inv_b


def multitask_loss(main_probs, structured_logits, notes_logits, targets, *,
                   alpha1, alpha2, eps=1e-10, block_rows=None):
    """Forward value of MultitaskLoss4OneStructured."""
    main_loss, aux1, aux2 = _loss_components(
        main_probs, structured_logits, notes_logits, targets,
        block_rows=block_rows)

    # .detach() on the denominators only -> stop_gradient (forward unchanged).
    # TODO(synk): forward-only; the Pallas call has no custom VJP, so the
    # detached-ratio gradient routing of the torch module is not reproduced.
    def ratio(l):
        return l / (jax.lax.stop_gradient(l) + eps)

    return ratio(main_loss) + alpha1 * ratio(aux1) + alpha2 * ratio(aux2)


def _reference(main_probs, structured_logits, notes_logits, targets,
               alpha1, alpha2, eps=1e-10):
    """Pure-JAX mirror of torch.nn.{NLLLoss, CrossEntropyLoss} + ratio form."""
    onehot = jax.nn.one_hot(targets, main_probs.shape[-1], dtype=jnp.float32)
    main = -jnp.mean(jnp.sum(onehot * jnp.log(main_probs.astype(jnp.float32)),
                             axis=-1))

    def ce(logits):
        logp = jax.nn.log_softmax(logits.astype(jnp.float32), axis=-1)
        return -jnp.mean(jnp.sum(onehot * logp, axis=-1))

    a1 = ce(structured_logits)
    a2 = ce(notes_logits)
    total = (main / (main + eps) + alpha1 * a1 / (a1 + eps)
             + alpha2 * a2 / (a2 + eps))
    return total, (main, a1, a2)


if __name__ == "__main__":
    ALPHA1 = 0.3
    ALPHA2 = 0.5

    # deliberately unaligned small shapes: exercises partial edge blocks and
    # a non-multiple-of-128 class dim (no host-side padding anywhere)
    B, C = 37, 21
    key = jax.random.PRNGKey(0)
    k1, k2, k3, k4 = jax.random.split(key, 4)

    main_probs = jax.nn.softmax(jax.random.normal(k1, (B, C), jnp.float32), -1)
    structured_logits = jax.random.normal(k2, (B, C), jnp.float32)
    notes_logits = jax.random.normal(k3, (B, C), jnp.float32)
    targets = jax.random.randint(k4, (B,), 0, C)

    ref_total, (ref_main, ref_a1, ref_a2) = _reference(
        main_probs, structured_logits, notes_logits, targets, ALPHA1, ALPHA2)

    # run once with the auto tile and once with a forced small tile
    # (3 blocks, partial last block) to exercise the batch-grid edge path.
    for block_rows in (None, 16):
        total = multitask_loss(main_probs, structured_logits, notes_logits,
                               targets, alpha1=ALPHA1, alpha2=ALPHA2,
                               block_rows=block_rows)
        main_l, a1, a2 = _loss_components(main_probs, structured_logits,
                                          notes_logits, targets,
                                          block_rows=block_rows)
        jax.block_until_ready((total, main_l, a1, a2))

        np.testing.assert_allclose(np.asarray(main_l), np.asarray(ref_main),
                                   rtol=1e-5, atol=1e-5)
        np.testing.assert_allclose(np.asarray(a1), np.asarray(ref_a1),
                                   rtol=1e-5, atol=1e-5)
        np.testing.assert_allclose(np.asarray(a2), np.asarray(ref_a2),
                                   rtol=1e-5, atol=1e-5)
        np.testing.assert_allclose(np.asarray(total), np.asarray(ref_total),
                                   rtol=1e-5, atol=1e-5)

    # bf16 smoke test: the wrapper no longer upcasts, so half-width HBM reads
    # flow straight into the kernel's in-register f32 math.
    mp16 = main_probs.astype(jnp.bfloat16)
    sl16 = structured_logits.astype(jnp.bfloat16)
    nl16 = notes_logits.astype(jnp.bfloat16)
    total16 = multitask_loss(mp16, sl16, nl16, targets,
                             alpha1=ALPHA1, alpha2=ALPHA2)
    ref16_total, _ = _reference(mp16, sl16, nl16, targets, ALPHA1, ALPHA2)
    jax.block_until_ready(total16)
    np.testing.assert_allclose(np.asarray(total16), np.asarray(ref16_total),
                               rtol=1e-4, atol=1e-4)

    print("KERNEL_OK")
</pallas_src>

<mosaic_0001>
module attributes {stable_mosaic.version = 11 : i64} {
  func.func @_partial_loss_kernel(%arg0: i32, %arg1: memref<37x1xi32, #tpu.memory_space<vmem>>, %arg2: memref<37x21xf32, #tpu.memory_space<vmem>>, %arg3: memref<37x21xf32, #tpu.memory_space<vmem>>, %arg4: memref<37x21xf32, #tpu.memory_space<vmem>>, %arg5: memref<1x1x128xf32, #tpu.memory_space<vmem>>) attributes {dimension_semantics = [#tpu.dimension_semantics<parallel>], iteration_bounds = array<i64: 1>, scalar_prefetch = 0 : i64, scratch_operands = 0 : i64, tpu.core_type = #tpu.core_type<tc>, window_params = [{transform_indices = @transform_0, window_bounds = array<i64: 37, 1>}, {transform_indices = @transform_1, window_bounds = array<i64: 37, 21>}, {transform_indices = @transform_2, window_bounds = array<i64: 37, 21>}, {transform_indices = @transform_3, window_bounds = array<i64: 37, 21>}, {transform_indices = @transform_4, window_bounds = array<i64: 1, 1, 128>}]} {
    %0 = tpu.iota {dimensions = array<i32: 1>} : vector<37x21xi32>
    %c0 = arith.constant 0 : index
    %c0_0 = arith.constant 0 : index
    %1 = vector.load %arg1[%c0, %c0_0] : memref<37x1xi32, #tpu.memory_space<vmem>>, vector<37x1xi32>
    %2 = vector.broadcast %1 : vector<37x1xi32> to vector<37x21xi32>
    %3 = arith.cmpi eq, %0, %2 : vector<37x21xi32>
    %4 = tpu.iota {dimensions = array<i32: 0>} : vector<37x1xi32>
    %c37_i32 = arith.constant 37 : i32
    %5 = arith.muli %arg0, %c37_i32 : i32
    %6 = vector.broadcast %5 : i32 to vector<37x1xi32>
    %7 = arith.addi %6, %4 : vector<37x1xi32>
    %c37_i32_1 = arith.constant 37 : i32
    %8 = vector.broadcast %c37_i32_1 : i32 to vector<37x1xi32>
    %9 = arith.cmpi slt, %7, %8 : vector<37x1xi32>
    %c0_2 = arith.constant 0 : index
    %c0_3 = arith.constant 0 : index
    %10 = vector.load %arg2[%c0_2, %c0_3] : memref<37x21xf32, #tpu.memory_space<vmem>>, vector<37x21xf32>
    %cst = arith.constant 0.000000e+00 : f32
    %11 = vector.broadcast %cst : f32 to vector<37x21xf32>
    %12 = arith.select %3, %10, %11 : vector<37x21xi1>, vector<37x21xf32>
    %cst_4 = arith.constant dense<0.000000e+00> : vector<37xf32>
    %13 = vector.multi_reduction <add>, %12, %cst_4 [1] : vector<37x21xf32> to vector<37xf32>
    %14 = vector.shape_cast %13 : vector<37xf32> to vector<37x1xf32>
    %15 = math.log %14 : vector<37x1xf32>
    %cst_5 = arith.constant 0.000000e+00 : f32
    %16 = vector.broadcast %cst_5 : f32 to vector<37x1xf32>
    %17 = arith.subf %16, %15 : vector<37x1xf32>
    %cst_6 = arith.constant 0.000000e+00 : f32
    %18 = vector.broadcast %cst_6 : f32 to vector<37x1xf32>
    %19 = arith.select %9, %17, %18 : vector<37x1xi1>, vector<37x1xf32>
    %20 = vector.shape_cast %19 : vector<37x1xf32> to vector<1x37x1xf32>
    %cst_7 = arith.constant dense<0.000000e+00> : vector<1xf32>
    %21 = vector.multi_reduction <add>, %20, %cst_7 [1, 2] : vector<1x37x1xf32> to vector<1xf32>
    %22 = vector.shape_cast %21 : vector<1xf32> to vector<1x1x1xf32>
    %23 = vector.extract %22[0, 0, 0] : f32 from vector<1x1x1xf32>
    %c0_8 = arith.constant 0 : index
    %c0_9 = arith.constant 0 : index
    %24 = vector.load %arg3[%c0_8, %c0_9] : memref<37x21xf32, #tpu.memory_space<vmem>>, vector<37x21xf32>
    %cst_10 = arith.constant dense<0xFF800000> : vector<37xf32>
    %25 = vector.multi_reduction <maximumf>, %24, %cst_10 [1] : vector<37x21xf32> to vector<37xf32>
    %26 = vector.shape_cast %25 : vector<37xf32> to vector<37x1xf32>
    %27 = vector.broadcast %26 : vector<37x1xf32> to vector<37x21xf32>
    %28 = arith.subf %24, %27 : vector<37x21xf32>
    %29 = math.exp %28 : vector<37x21xf32>
    %cst_11 = arith.constant dense<0.000000e+00> : vector<37xf32>
    %30 = vector.multi_reduction <add>, %29, %cst_11 [1] : vector<37x21xf32> to vector<37xf32>
    %31 = vector.shape_cast %30 : vector<37xf32> to vector<37x1xf32>
    %32 = math.log %31 : vector<37x1xf32>
    %33 = arith.addf %26, %32 : vector<37x1xf32>
    %cst_12 = arith.constant 0.000000e+00 : f32
    %34 = vector.broadcast %cst_12 : f32 to vector<37x21xf32>
    %35 = arith.select %3, %24, %34 : vector<37x21xi1>, vector<37x21xf32>
    %cst_13 = arith.constant dense<0.000000e+00> : vector<37xf32>
    %36 = vector.multi_reduction <add>, %35, %cst_13 [1] : vector<37x21xf32> to vector<37xf32>
    %37 = vector.shape_cast %36 : vector<37xf32> to vector<37x1xf32>
    %38 = arith.subf %33, %37 : vector<37x1xf32>
    %cst_14 = arith.constant 0.000000e+00 : f32
    %39 = vector.broadcast %cst_14 : f32 to vector<37x1xf32>
    %40 = arith.select %9, %38, %39 : vector<37x1xi1>, vector<37x1xf32>
    %41 = vector.shape_cast %40 : vector<37x1xf32> to vector<1x37x1xf32>
    %cst_15 = arith.constant dense<0.000000e+00> : vector<1xf32>
    %42 = vector.multi_reduction <add>, %41, %cst_15 [1, 2] : vector<1x37x1xf32> to vector<1xf32>
    %43 = vector.shape_cast %42 : vector<1xf32> to vector<1x1x1xf32>
    %44 = vector.extract %43[0, 0, 0] : f32 from vector<1x1x1xf32>
    %c0_16 = arith.constant 0 : index
    %c0_17 = arith.constant 0 : index
    %45 = vector.load %arg4[%c0_16, %c0_17] : memref<37x21xf32, #tpu.memory_space<vmem>>, vector<37x21xf32>
    %cst_18 = arith.constant dense<0xFF800000> : vector<37xf32>
    %46 = vector.multi_reduction <maximumf>, %45, %cst_18 [1] : vector<37x21xf32> to vector<37xf32>
    %47 = vector.shape_cast %46 : vector<37xf32> to vector<37x1xf32>
    %48 = vector.broadcast %47 : vector<37x1xf32> to vector<37x21xf32>
    %49 = arith.subf %45, %48 : vector<37x21xf32>
    %50 = math.exp %49 : vector<37x21xf32>
    %cst_19 = arith.constant dense<0.000000e+00> : vector<37xf32>
    %51 = vector.multi_reduction <add>, %50, %cst_19 [1] : vector<37x21xf32> to vector<37xf32>
    %52 = vector.shape_cast %51 : vector<37xf32> to vector<37x1xf32>
    %53 = math.log %52 : vector<37x1xf32>
    %54 = arith.addf %47, %53 : vector<37x1xf32>
    %cst_20 = arith.constant 0.000000e+00 : f32
    %55 = vector.broadcast %cst_20 : f32 to vector<37x21xf32>
    %56 = arith.select %3, %45, %55 : vector<37x21xi1>, vector<37x21xf32>
    %cst_21 = arith.constant dense<0.000000e+00> : vector<37xf32>
    %57 = vector.multi_reduction <add>, %56, %cst_21 [1] : vector<37x21xf32> to vector<37xf32>
    %58 = vector.shape_cast %57 : vector<37xf32> to vector<37x1xf32>
    %59 = arith.subf %54, %58 : vector<37x1xf32>
    %cst_22 = arith.constant 0.000000e+00 : f32
    %60 = vector.broadcast %cst_22 : f32 to vector<37x1xf32>
    %61 = arith.select %9, %59, %60 : vector<37x1xi1>, vector<37x1xf32>
    %62 = vector.shape_cast %61 : vector<37x1xf32> to vector<1x37x1xf32>
    %cst_23 = arith.constant dense<0.000000e+00> : vector<1xf32>
    %63 = vector.multi_reduction <add>, %62, %cst_23 [1, 2] : vector<1x37x1xf32> to vector<1xf32>
    %64 = vector.shape_cast %63 : vector<1xf32> to vector<1x1x1xf32>
    %65 = vector.extract %64[0, 0, 0] : f32 from vector<1x1x1xf32>
    %66 = tpu.iota {dimensions = array<i32: 2>} : vector<1x1x128xi32>
    %c0_i32 = arith.constant 0 : i32
    %67 = vector.broadcast %c0_i32 : i32 to vector<1x1x128xi32>
    %68 = arith.cmpi eq, %66, %67 : vector<1x1x128xi32>
    %cst_24 = arith.constant 0.000000e+00 : f32
    %69 = vector.broadcast %23 : f32 to vector<1x1x128xf32>
    %70 = vector.broadcast %cst_24 : f32 to vector<1x1x128xf32>
    %71 = arith.select %68, %69, %70 : vector<1x1x128xi1>, vector<1x1x128xf32>
    %c1_i32 = arith.constant 1 : i32
    %72 = vector.broadcast %c1_i32 : i32 to vector<1x1x128xi32>
    %73 = arith.cmpi eq, %66, %72 : vector<1x1x128xi32>
    %cst_25 = arith.constant 0.000000e+00 : f32
    %74 = vector.broadcast %44 : f32 to vector<1x1x128xf32>
    %75 = vector.broadcast %cst_25 : f32 to vector<1x1x128xf32>
    %76 = arith.select %73, %74, %75 : vector<1x1x128xi1>, vector<1x1x128xf32>
    %77 = arith.addf %71, %76 : vector<1x1x128xf32>
    %c2_i32 = arith.constant 2 : i32
    %78 = vector.broadcast %c2_i32 : i32 to vector<1x1x128xi32>
    %79 = arith.cmpi eq, %66, %78 : vector<1x1x128xi32>
    %cst_26 = arith.constant 0.000000e+00 : f32
    %80 = vector.broadcast %65 : f32 to vector<1x1x128xf32>
    %81 = vector.broadcast %cst_26 : f32 to vector<1x1x128xf32>
    %82 = arith.select %79, %80, %81 : vector<1x1x128xi1>, vector<1x1x128xf32>
    %83 = arith.addf %77, %82 : vector<1x1x128xf32>
    %c0_27 = arith.constant 0 : index
    %c0_28 = arith.constant 0 : index
    %c0_29 = arith.constant 0 : index
    %84 = vector.load %arg5[%c0_27, %c0_28, %c0_29] : memref<1x1x128xf32, #tpu.memory_space<vmem>>, vector<1x1x128xf32>
    tpu.vector_store %arg5[%c0_27, %c0_28, %c0_29], %83 {strides = array<i32>} : memref<1x1x128xf32, #tpu.memory_space<vmem>>, vector<1x1x128xf32>,
    return
  }
  func.func @transform_0(%arg0: i32) -> (i32, i32) {
    %c0_i32 = arith.constant 0 : i32
    %c0_i32_0 = arith.constant 0 : i32
    return %arg0, %c0_i32 : i32, i32
  }
  func.func @transform_1(%arg0: i32) -> (i32, i32) {
    %c0_i32 = arith.constant 0 : i32
    %c0_i32_0 = arith.constant 0 : i32
    return %arg0, %c0_i32 : i32, i32
  }
  func.func @transform_2(%arg0: i32) -> (i32, i32) {
    %c0_i32 = arith.constant 0 : i32
    %c0_i32_0 = arith.constant 0 : i32
    return %arg0, %c0_i32 : i32, i32
  }
  func.func @transform_3(%arg0: i32) -> (i32, i32) {
    %c0_i32 = arith.constant 0 : i32
    %c0_i32_0 = arith.constant 0 : i32
    return %arg0, %c0_i32 : i32, i32
  }
  func.func @transform_4(%arg0: i32) -> (i32, i32, i32) {
    %c0_i32 = arith.constant 0 : i32
    %c0_i32_0 = arith.constant 0 : i32
    %c0_i32_1 = arith.constant 0 : i32
    return %arg0, %c0_i32, %c0_i32_0 : i32, i32, i32
  }
}

</mosaic_0001>

<bundles_post_ra>
// kernel: tpu_custom_call.1
= control target key start
LH: loop header
LB: loop body
LE: loop exit
PB: predicated region body
PF: predicated region fallthrough
CT: control target
= control target key end

     0   :  { %vm73_vm0 = vcmask 171008   ;;  %v466_v6 = vmov 0   ;;  %s786_s0 = inlined_call_operand.vmem [shape: s32[37,1], index: 0, kind: input, shape index: {}]   ;;  %s787_s1 = inlined_call_operand.vmem [shape: f32[37,21], index: 1, kind: input, shape index: {}]   ;;  %s788_s2 = inlined_call_operand.vmem [shape: f32[37,21], index: 2, kind: input, shape index: {}]   ;;  %s789_s3 = inlined_call_operand.vmem [shape: f32[37,21], index: 3, kind: input, shape index: {}]   ;;  %s790_s4 = inlined_call_operand.hbm [shape: f32[1,1,128], index: 4, kind: output, shape index: {}]  }
   0x1   :  { %v496_v0 = vld [vmem:[%s788_s2 + $0x10] sm:$0xff]  ;;  %v501_v1 = vld [vmem:[%s788_s2] sm:$0xff]  ;;  %v515_v5 = vld [vmem:[%s788_s2 + $0x8] sm:$0xff]  ;;  %391 = vset.pattern.permute.xlu1 %v466_v6  ;;  %390 = vset.pattern.permute.xlu0 %v466_v6 }
   0x2   :  { %v506_v2 = vld [vmem:[%s789_s3] sm:$0xff]  ;;  %v141_v3 = vsel %vm73_vm0, %v496_v0, -inf  ;;  %v135_v4 = vsel %vm73_vm0, %v501_v1, -inf  ;;  %v138_v8 = vsel %vm73_vm0, %v515_v5, -inf  ;;  %v524_v9 = vld [vmem:[%s788_s2 + $0x18] sm:$0xff]  ;;  %v529_v10 = vld [vmem:[%s789_s3 + $0x8] sm:$0xff] }
   0x3   :  { %142 = vmax.xlane.f32.xlu1 %v141_v3  ;;  %136 = vmax.xlane.f32.xlu0 %v135_v4  ;;  %v248_v7 = vsel %vm73_vm0, %v506_v2, -inf }
   0x4   :  { %9 = vsyncpa [#allocation3], 0  ;;  %v144_v11 = vsel %vm73_vm0, %v524_v9, -inf  ;;  %v251_v12 = vsel %vm73_vm0, %v529_v10, -inf  ;;  %vm86_vm1 = vcmask 167936   ;;  %v543_v14 = vld [vmem:[%s789_s3 + $0x10] sm:$0xff]  ;;  %v18_v38 = vlaneseq }
   0x5   :  { %v538_v13 = vld [vmem:[%s788_s2 + $0x20] sm:$0x1f]  ;;  %v254_v16 = vsel %vm73_vm0, %v543_v14, -inf  ;;  %v557_v18 = vld [vmem:[%s789_s3 + $0x18] sm:$0xff]  ;;  %v21_v21 = vld [vmem:[%s786_s0 + $0x8] sm:$0xff]  ;;  %vm110_vm7 = vcmask 7168  }
   0x6   :  { %v147_v15 = vsel %vm86_vm1, %v538_v13, -inf  ;;  %v552_v17 = vld [vmem:[%s789_s3 + $0x20] sm:$0x1f]  ;;  %v257_v20 = vsel %vm73_vm0, %v557_v18, -inf  ;;  %v22_v22 = vld [vmem:[%s786_s0 + $0x10] sm:$0xff]  ;;  %v23_v24 = vld [vmem:[%s786_s0 + $0x18] sm:$0xff] }
   0x7   :  { %249 = vmax.xlane.f32.xlu1 %v248_v7  ;;  %139 = vmax.xlane.f32.xlu0 %v138_v8  ;;  %v260_v19 = vsel %vm86_vm1, %v552_v17, -inf  ;;  %v20_v23 = vld [vmem:[%s786_s0] sm:$0xff]  ;;  %v611_v46 = vand.u32 127, %v18_v38  ;;  %v65_v47 = vld [vmem:[%s787_s1 + $0x10] sm:$0xff]  ;;  %v64_v49 = vld [vmem:[%s787_s1 + $0x8] sm:$0xff]  ;;  %vm118_vm9 = vcmask 4096  }
   0x8   :  { %v24_v25 = vld [vmem:[%s786_s0 + $0x20] sm:$0x1f]  ;;  %v66_v61 = vld [vmem:[%s787_s1 + $0x18] sm:$0xff]  ;;  %s467_s28 = smov [#allocation2]  }
   0x9   :  { %v63_v48 = vld [vmem:[%s787_s1] sm:$0xff]  ;;  %vm359_vm10 = vcmp.eq.s32.totalorder %v611_v46, 1  ;;  %vm356_vm11 = vcmp.eq.s32.totalorder %v611_v46, 0  ;;  %vm363_vm12 = vcmp.eq.s32.totalorder %v611_v46, 2  ;;  %s374_s29 = sshll.u32 %s467_s28, 4  ;;  %s375_s29 = int_to_ptr.vmem [resolvable:$true] %s374_s29 }
   0xa   :  { %v67_v8 = vld [vmem:[%s787_s1 + $0x20] sm:$0x1f]  ;;  %s442_s30 = scalar_lea.vmem %s375_s29, 16  ;;  %s446_s5 = scalar_lea.vmem %s375_s29, 32 }
   0xb   :  { %145 = vmax.xlane.f32.xlu1 %v144_v11  ;;  %252 = vmax.xlane.f32.xlu0 %v251_v12  ;;  %p443_p0 = scmp.ne.s32.totalorder %s375_s29, %s442_s30  ;;  %p447_p1 = scmp.lt.s32.totalorder %s375_s29, %s375_s29 }
   0xc   :  { %p448_p2 = scmp.lt.s32.totalorder %s446_s5, %s442_s30 }
   0xe   :  { %p449_p3 = por %p448_p2, %p447_p1 }
   0xf   :  { %148 = vmax.xlane.f32.xlu1 %v147_v15  ;;  %255 = vmax.xlane.f32.xlu0 %v254_v16 }
  0x10   :  { %p450_p4 = pnand %p449_p3, %p443_p0 }
  0x13   :  { %261 = vmax.xlane.f32.xlu1 %v260_v19  ;;  %258 = vmax.xlane.f32.xlu0 %v257_v20 }
  0x24   :  { %29 = vperm.xlu1 %391, %v21_v21  }
  0x28   :  { %32 = vperm.xlu1 %391, %v22_v22  }
  0x29   :  { %26 = vperm.xlu0 %390, %v20_v23  }
  0x2c   :  { %35 = vperm.xlu1 %391, %v23_v24  }
  0x30   :  { %38 = vperm.xlu1 %391, %v24_v25  }
  0x90   :  { %v578_v26 = vpop.xlane.xlu1 %142  ;;  %v580_v27 = vpop.xlane.xlu0 %136 }
  0x91   :  { %v150_v33 = vsub.f32 %v501_v1, %v580_v27  ;;  %v152_v35 = vsub.f32 %v496_v0, %v578_v26 }
  0x93   :  { %v155_v39 = vmul.f32 1.442695, %v150_v33  ;;  %v159_v40 = vmul.f32 1.442695, %v152_v35 }
  0x94   :  { %v582_v28 = vpop.xlane.xlu1 %249  ;;  %v584_v29 = vpop.xlane.xlu0 %139 }
  0x95   :  { %v151_v37 = vsub.f32 %v515_v5, %v584_v29  ;;  %v263_v41 = vsub.f32 %v506_v2, %v582_v28  ;;  %392 = vpow2.f32 %v155_v39 }
  0x96   :  { %394 = vpow2.f32 %v159_v40 }
  0x97   :  { %v157_v44 = vmul.f32 1.442695, %v151_v37  ;;  %v268_v50 = vmul.f32 1.442695, %v263_v41 }
  0x98   :  { %v586_v30 = vpop.xlane.xlu1 %145  ;;  %v588_v31 = vpop.xlane.xlu0 %252 }
  0x99   :  { %v264_v45 = vsub.f32 %v529_v10, %v588_v31  ;;  %v153_v51 = vsub.f32 %v524_v9, %v586_v30  ;;  %396 = vpow2.f32 %v157_v44 }
  0x9a   :  { %398 = vpow2.f32 %v268_v50 }
  0x9b   :  { %v270_v54 = vmul.f32 1.442695, %v264_v45  ;;  %v161_v63 = vmul.f32 1.442695, %v153_v51 }
  0x9c   :  { %v590_v32 = vpop.xlane.xlu1 %148  ;;  %v594_v34 = vpop.xlane.xlu0 %255 }
  0x9d   :  { %v265_v55 = vsub.f32 %v543_v14, %v594_v34  ;;  %400 = vpow2.f32 %v270_v54  ;;  %v154_v16 = vsub.f32 %v538_v13, %v590_v32 }
  0x9e   :  { %402 = vpow2.f32 %v161_v63 }
  0x9f   :  { %v272_v4 = vmul.f32 1.442695, %v265_v55  ;;  %v393_v11 = vpop.eup %392  ;;  %v163_v23 = vmul.f32 1.442695, %v154_v16 }
  0xa0   :  { %v598_v36 = vpop.xlane.xlu1 %261  ;;  %v604_v42 = vpop.xlane.xlu0 %258  ;;  %v165_v22 = vsel %vm73_vm0, %v393_v11, 0.0 }
  0xa1   :  { %v395_v15 = vpop.eup %394  ;;  %404 = vpow2.f32 %v272_v4  ;;  %v266_v24 = vsub.f32 %v557_v18, %v604_v42  ;;  %v267_v39 = vsub.f32 %v552_v17, %v598_v36 }
  0xa2   :  { %v171_v35 = vsel %vm73_vm0, %v395_v15, 0.0  ;;  %406 = vpow2.f32 %v163_v23 }
  0xa3   :  { %v397_v20 = vpop.eup %396  ;;  %v274_v40 = vmul.f32 1.442695, %v266_v24 }
  0xa4   :  { %v606_v43 = vpop.permute.xlu1 %29  ;;  %v399_v25 = vpop.eup %398  ;;  %v168_v33 = vsel %vm73_vm0, %v397_v20, 0.0 }
  0xa5   :  { %vm41_vm2 = vcmp.eq.s32.totalorder %v611_v46, %v606_v43  ;;  %v278_v44 = vsel %vm73_vm0, %v399_v25, 0.0  ;;  %408 = vpow2.f32 %v274_v40 }
  0xa6   :  { %v69_v58 = vsel %vm41_vm2, %v64_v49, 0.0  ;;  %v196_v54 = vsel %vm41_vm2, %v515_v5, 0.0  ;;  %v309_v5 = vsel %vm41_vm2, %v529_v10, 0.0 }
  0xa7   :  { %v77_v3 = vsel %vm73_vm0, %v69_v58, 0.0  ;;  %v401_v37 = vpop.eup %400 }
  0xa8   :  { %v626_v52 = vpop.permute.xlu1 %32  ;;  %v628_v53 = vpop.permute.xlu0 %26  ;;  %v281_v45 = vsel %vm73_vm0, %v401_v37, 0.0 }
  0xa9   :  { %vm42_vm3 = vcmp.eq.s32.totalorder %v611_v46, %v626_v52  ;;  %vm40_vm4 = vcmp.eq.s32.totalorder %v611_v46, %v628_v53  ;;  %v403_v41 = vpop.eup %402 }
  0xaa   :  { %v70_v56 = vsel %vm42_vm3, %v65_v47, 0.0  ;;  %v68_v57 = vsel %vm40_vm4, %v63_v48, 0.0  ;;  %v276_v48 = vmul.f32 1.442695, %v267_v39  ;;  %v174_v50 = vsel %vm73_vm0, %v403_v41, 0.0 }
  0xab   :  { %v80_v59 = vsel %vm73_vm0, %v70_v56, 0.0  ;;  %v74_v60 = vsel %vm73_vm0, %v68_v57, 0.0  ;;  %v405_v47 = vpop.eup %404  ;;  %v195_v51 = vsel %vm40_vm4, %v501_v1, 0.0  ;;  %v203_v56 = vsel %vm73_vm0, %v196_v54, 0.0 }
  0xac   :  { %v650_v62 = vpop.permute.xlu1 %35  ;;  %81 = vadd.xlane.f32.xlu0 %v80_v59  ;;  %75 = vadd.xlane.f32.xlu1 %v74_v60  ;;  %v284_v49 = vsel %vm73_vm0, %v405_v47, 0.0  ;;  %410 = vpow2.f32 %v276_v48  ;;  %v200_v55 = vsel %vm73_vm0, %v195_v51, 0.0  ;;  %v407_v57 = vpop.eup %406  ;;  %v197_v58 = vsel %vm42_vm3, %v496_v0, 0.0 }
  0xad   :  { %vm43_vm5 = vcmp.eq.s32.totalorder %v611_v46, %v650_v62  ;;  %v206_v1 = vsel %vm73_vm0, %v197_v58, 0.0  ;;  %v177_v59 = vsel %vm86_vm1, %v407_v57, 0.0  ;;  %v310_v0 = vsel %vm42_vm3, %v543_v14, 0.0 }
  0xae   :  { %v71_v6 = vsel %vm43_vm5, %v66_v61, 0.0  ;;  %v316_v61 = vsel %vm73_vm0, %v309_v5, 0.0  ;;  %v319_v4 = vsel %vm73_vm0, %v310_v0, 0.0  ;;  %v311_v10 = vsel %vm43_vm5, %v557_v18, 0.0 }
  0xaf   :  { %v83_v7 = vsel %vm73_vm0, %v71_v6, 0.0  ;;  %v409_v60 = vpop.eup %408  ;;  %v308_v43 = vsel %vm40_vm4, %v506_v2, 0.0  ;;  %v198_v52 = vsel %vm43_vm5, %v524_v9, 0.0 }
  0xb0   :  { %v662_v12 = vpop.permute.xlu1 %38  ;;  %84 = vadd.xlane.f32.xlu0 %v83_v7  ;;  %78 = vadd.xlane.f32.xlu1 %v77_v3  ;;  %v287_v63 = vsel %vm73_vm0, %v409_v60, 0.0  ;;  %v322_v7 = vsel %vm73_vm0, %v311_v10, 0.0  ;;  %v313_v14 = vsel %vm73_vm0, %v308_v43, 0.0 }
  0xb1   :  { %vm44_vm6 = vcmp.eq.s32.totalorder %v611_v46, %v662_v12 }
  0xb2   :  { %v72_v19 = vsel %vm44_vm6, %v67_v8, 0.0  ;;  %v209_v8 = vsel %vm73_vm0, %v198_v52, 0.0  ;;  %v199_v18 = vsel %vm44_vm6, %v538_v13, 0.0  ;;  %v312_v53 = vsel %vm44_vm6, %v552_v17, 0.0 }
  0xb3   :  { %v87_v21 = vsel %vm86_vm1, %v72_v19, 0.0  ;;  %v212_v2 = vsel %vm86_vm1, %v199_v18, 0.0  ;;  %v325_v11 = vsel %vm86_vm1, %v312_v53, 0.0  ;;  %v46_v17 = vshrl.u32 %v18_v38, 7 }
  0xb4   :  { %88 = vadd.xlane.f32.xlu0 %v87_v21  ;;  %166 = vadd.xlane.f32.xlu1 %v165_v22 }
  0xb5   :  { %v737_v39 = vadd.s32 32, %v46_v17 }
  0xb6   :  { %v411_v3 = vpop.eup %410 }
  0xb7   :  { %v290_v6 = vsel %vm86_vm1, %v411_v3, 0.0  ;;  %vm62_vm8 = vcmp.lt.s32.totalorder %v737_v39, 37 }
  0xb8   :  { %169 = vadd.xlane.f32.xlu0 %v168_v33  ;;  %172 = vadd.xlane.f32.xlu1 %v171_v35 }
  0xbc   :  { %279 = vadd.xlane.f32.xlu0 %v278_v44  ;;  %282 = vadd.xlane.f32.xlu1 %v281_v45 }
  0xc0   :  { %285 = vadd.xlane.f32.xlu0 %v284_v49  ;;  %175 = vadd.xlane.f32.xlu1 %v174_v50 }
  0xc4   :  { %201 = vadd.xlane.f32.xlu0 %v200_v55  ;;  %204 = vadd.xlane.f32.xlu1 %v203_v56 }
  0xc8   :  { %207 = vadd.xlane.f32.xlu0 %v206_v1  ;;  %178 = vadd.xlane.f32.xlu1 %v177_v59 }
  0xcc   :  { %317 = vadd.xlane.f32.xlu0 %v316_v61  ;;  %288 = vadd.xlane.f32.xlu1 %v287_v63 }
  0xd0   :  { %320 = vadd.xlane.f32.xlu0 %v319_v4  ;;  %291 = vadd.xlane.f32.xlu1 %v290_v6 }
  0xd4   :  { %323 = vadd.xlane.f32.xlu0 %v322_v7  ;;  %314 = vadd.xlane.f32.xlu1 %v313_v14 }
  0xd8   :  { %210 = vadd.xlane.f32.xlu1 %v209_v8 }
  0xdc   :  { %213 = vadd.xlane.f32.xlu1 %v212_v2 }
  0xe0   :  { %326 = vadd.xlane.f32.xlu1 %v325_v11 }
 0x139   :  { %v82_v9 = vpop.xlane.xlu0 %81  ;;  %v76_v62 = vpop.xlane.xlu1 %75 }
 0x13a   :  { %412 = vlog2.f32 %v82_v9 }
 0x13b   :  { %414 = vlog2.f32 %v76_v62 }
 0x13d   :  { %v85_v15 = vpop.xlane.xlu0 %84  ;;  %v79_v16 = vpop.xlane.xlu1 %78 }
 0x13e   :  { %416 = vlog2.f32 %v85_v15 }
 0x13f   :  { %418 = vlog2.f32 %v79_v16 }
 0x141   :  { %v89_v13 = vpop.xlane.xlu0 %88  ;;  %v167_v19 = vpop.xlane.xlu1 %166 }
 0x142   :  { %420 = vlog2.f32 %v89_v13 }
 0x144   :  { %v413_v20 = vpop.eup %412 }
 0x145   :  { %v415_v21 = vpop.eup %414  ;;  %v170_v22 = vpop.xlane.xlu0 %169  ;;  %v95_v25 = vmul.f32 0.6931472, %v413_v20 }
 0x146   :  { %v173_v23 = vpop.xlane.xlu1 %172  ;;  %v91_v12 = vmul.f32 0.6931472, %v415_v21  ;;  %422 = vlog2.f32 %v170_v22 }
 0x147   :  { %v102_v47 = vsub.f32 0.0, %v95_v25  ;;  %424 = vlog2.f32 %v167_v19 }
 0x148   :  { %v417_v24 = vpop.eup %416  ;;  %v100_v40 = vsub.f32 0.0, %v91_v12  ;;  %426 = vlog2.f32 %v173_v23 }
 0x149   :  { %v419_v33 = vpop.eup %418  ;;  %v280_v35 = vpop.xlane.xlu0 %279  ;;  %v97_v41 = vmul.f32 0.6931472, %v417_v24  ;;  %v114_v58 = vsel %vm110_vm7, %v102_v47, 0.0 }
 0x14a   :  { %v283_v37 = vpop.xlane.xlu1 %282  ;;  %v93_v44 = vmul.f32 0.6931472, %v419_v33  ;;  %v111_v51 = vsel %vm110_vm7, %v100_v40, 0.0 }
 0x14b   :  { %v103_v54 = vsub.f32 0.0, %v97_v41  ;;  %428 = vlog2.f32 %v283_v37 }
 0x14c   :  { %v421_v45 = vpop.eup %420  ;;  %v101_v48 = vsub.f32 0.0, %v93_v44  ;;  %430 = vlog2.f32 %v280_v35 }
 0x14d   :  { %v99_v49 = vmul.f32 0.6931472, %v421_v45  ;;  %v286_v50 = vpop.xlane.xlu0 %285  ;;  %v116_v61 = vsel %vm110_vm7, %v103_v54, 0.0 }
 0x14e   :  { %v176_v38 = vpop.xlane.xlu1 %175  ;;  %v112_v55 = vsel %vm110_vm7, %v101_v48, 0.0 }
 0x14f   :  { %v113_v56 = vadd.f32 %v112_v55, %v111_v51  ;;  %v104_v57 = vsub.f32 0.0, %v99_v49  ;;  %432 = vlog2.f32 %v176_v38 }
 0x150   :  { %v423_v0 = vpop.eup %422  ;;  %434 = vlog2.f32 %v286_v50 }
 0x151   :  { %v202_v1 = vpop.xlane.xlu0 %201  ;;  %v109_v60 = vsel %vm62_vm8, %v104_v57, 0.0  ;;  %v115_v5 = vadd.f32 %v114_v58, %v113_v56  ;;  %v425_v10 = vpop.eup %424  ;;  %v183_v7 = vmul.f32 0.6931472, %v423_v0 }
 0x152   :  { %v205_v59 = vpop.xlane.xlu1 %204  ;;  %v119_v63 = vsel %vm118_vm9, %v109_v60, 0.0  ;;  %v427_v14 = vpop.eup %426  ;;  %v181_v8 = vmul.f32 0.6931472, %v425_v10 }
 0x153   :  { %v117_v3 = vadd.f32 %v116_v61, %v115_v5  ;;  %v185_v53 = vmul.f32 0.6931472, %v427_v14  ;;  %v191_v11 = vadd.f32 %v183_v7, %v584_v29 }
 0x154   :  { %v190_v13 = vadd.f32 %v181_v8, %v580_v27 }
 0x155   :  { %v120_v6 = vadd.f32 %v119_v63, %v117_v3  ;;  %v208_v43 = vpop.xlane.xlu0 %207  ;;  %v429_v52 = vpop.eup %428  ;;  %v216_v21 = vsub.f32 %v191_v11, %v205_v59  ;;  %v192_v22 = vadd.f32 %v185_v53, %v578_v26 }
 0x156   :  { %v179_v4 = vpop.xlane.xlu1 %178  ;;  %v431_v2 = vpop.eup %430  ;;  %v296_v9 = vmul.f32 0.6931472, %v429_v52  ;;  %v215_v25 = vsub.f32 %v190_v13, %v202_v1 }
 0x157   :  { %436 = vlog2.f32 %v179_v4  ;;  %121 = vadd.xlane.f32.xlu0 %v120_v6  ;;  %v294_v16 = vmul.f32 0.6931472, %v431_v2  ;;  %v226_v37 = vsel %vm110_vm7, %v216_v21, 0.0  ;;  %v217_v40 = vsub.f32 %v192_v22, %v208_v43 }
 0x158   :  { %v304_v17 = vadd.f32 %v296_v9, %v588_v31  ;;  %v225_v26 = vsel %vm110_vm7, %v215_v25, 0.0 }
 0x159   :  { %v318_v62 = vpop.xlane.xlu0 %317  ;;  %v433_v15 = vpop.eup %432  ;;  %v303_v29 = vadd.f32 %v294_v16, %v582_v28  ;;  %v227_v50 = vadd.f32 %v226_v37, %v225_v26  ;;  %v228_v28 = vsel %vm110_vm7, %v217_v40, 0.0 }
 0x15a   :  { %v289_v18 = vpop.xlane.xlu1 %288  ;;  %v435_v20 = vpop.eup %434  ;;  %v187_v23 = vmul.f32 0.6931472, %v433_v15  ;;  %v329_v45 = vsub.f32 %v304_v17, %v318_v62 }
 0x15b   :  { %438 = vlog2.f32 %v289_v18  ;;  %v298_v24 = vmul.f32 0.6931472, %v435_v20  ;;  %v229_v5 = vadd.f32 %v228_v28, %v227_v50 }
 0x15c   :  { %v193_v47 = vadd.f32 %v187_v23, %v586_v30  ;;  %v339_v56 = vsel %vm110_vm7, %v329_v45, 0.0 }
 0x15d   :  { %v321_v35 = vpop.xlane.xlu0 %320  ;;  %v305_v31 = vadd.f32 %v298_v24, %v594_v34 }
 0x15e   :  { %v292_v19 = vpop.xlane.xlu1 %291 }
 0x15f   :  { %440 = vlog2.f32 %v292_v19  ;;  %v330_v58 = vsub.f32 %v305_v31, %v321_v35 }
 0x161   :  { %v437_v12 = vpop.eup %436  ;;  %v324_v57 = vpop.xlane.xlu0 %323  ;;  %v341_v4 = vsel %vm110_vm7, %v330_v58, 0.0 }
 0x162   :  { %v315_v33 = vpop.xlane.xlu1 %314  ;;  %v189_v44 = vmul.f32 0.6931472, %v437_v12 }
 0x163   :  { %v328_v27 = vsub.f32 %v303_v29, %v315_v33 }
 0x164   :  { %v194_v30 = vadd.f32 %v189_v44, %v590_v32 }
 0x165   :  { %v439_v41 = vpop.eup %438  ;;  %v338_v54 = vsel %vm110_vm7, %v328_v27, 0.0 }
 0x166   :  { %v300_v48 = vmul.f32 0.6931472, %v439_v41  ;;  %v211_v49 = vpop.xlane.xlu1 %210  ;;  %v340_v61 = vadd.f32 %v339_v56, %v338_v54 }
 0x167   :  { %v218_v38 = vsub.f32 %v193_v47, %v211_v49 }
 0x168   :  { %v306_v51 = vadd.f32 %v300_v48, %v604_v42  ;;  %v342_v14 = vadd.f32 %v341_v4, %v340_v61 }
 0x169   :  { %v441_v55 = vpop.eup %440  ;;  %v230_v34 = vsel %vm110_vm7, %v218_v38, 0.0 }
 0x16a   :  { %v302_v1 = vmul.f32 0.6931472, %v441_v55  ;;  %v331_v59 = vsub.f32 %v306_v51, %v324_v57  ;;  %v214_v60 = vpop.xlane.xlu1 %213  ;;  %v231_v0 = vadd.f32 %v230_v34, %v229_v5 }
 0x16b   :  { %v219_v63 = vsub.f32 %v194_v30, %v214_v60 }
 0x16c   :  { %v307_v3 = vadd.f32 %v302_v1, %v598_v36  ;;  %v343_v6 = vsel %vm110_vm7, %v331_v59, 0.0 }
 0x16d   :  { %v224_v42 = vsel %vm62_vm8, %v219_v63, 0.0  ;;  %v344_v8 = vadd.f32 %v343_v6, %v342_v14 }
 0x16e   :  { %v327_v32 = vpop.xlane.xlu1 %326  ;;  %v232_v10 = vsel %vm118_vm9, %v224_v42, 0.0 }
 0x16f   :  { %v332_v43 = vsub.f32 %v307_v3, %v327_v32  ;;  %v233_v7 = vadd.f32 %v232_v10, %v231_v0 }
 0x171   :  { %v337_v52 = vsel %vm62_vm8, %v332_v43, 0.0  ;;  %234 = vadd.xlane.f32.xlu1 %v233_v7 }
 0x172   :  { %v345_v36 = vsel %vm118_vm9, %v337_v52, 0.0 }
 0x173   :  { %v346_v18 = vadd.f32 %v345_v36, %v344_v8 }
 0x175   :  { %347 = vadd.xlane.f32.xlu0 %v346_v18 }
 0x1e4   :  { %v122_v2 = vpop.xlane.xlu0 %121 }
 0x1e5   :  { %v123_v53 = vrot.slane %v122_v2, 4 }
 0x1e7   :  { %v124_v11 = vadd.f32 %v123_v53, %v122_v2 }
 0x1e9   :  { %v125_v9 = vrot.slane %v124_v11, 2 }
 0x1eb   :  { %v126_v62 = vadd.f32 %v125_v9, %v124_v11 }
 0x1ed   :  { %v127_v15 = vrot.slane %v126_v62, 1 }
 0x1ef   :  { %v128_v16 = vadd.f32 %v127_v15, %v126_v62 }
 0x1f1   :  { %382 = vpush %v128_v16 }
 0x1fe   :  { %v235_v13 = vpop.xlane.xlu1 %234 }
 0x1ff   :  { %v236_v19 = vrot.slane %v235_v13, 4 }
 0x201   :  { %v237_v20 = vadd.f32 %v236_v19, %v235_v13 }
 0x202   :  { %v348_v21 = vpop.xlane.xlu0 %347 }
 0x203   :  { %v238_v39 = vrot.slane %v237_v20, 2  ;;  %v349_v22 = vrot.slane %v348_v21, 4 }
 0x205   :  { %v239_v23 = vadd.f32 %v238_v39, %v237_v20  ;;  %v350_v17 = vadd.f32 %v349_v22, %v348_v21 }
 0x207   :  { %v351_v12 = vrot.slane %v350_v17, 2  ;;  %v240_v24 = vrot.slane %v239_v23, 1 }
 0x209   :  { %v352_v25 = vadd.f32 %v351_v12, %v350_v17  ;;  %v241_v29 = vadd.f32 %v240_v24, %v239_v23 }
 0x20b   :  { %384 = vpush %v241_v29  ;;  %v353_v33 = vrot.slane %v352_v25, 1 }
 0x20d   :  { %v354_v35 = vadd.f32 %v353_v33, %v352_v25 }
 0x20f   :  { %386 = vpush %v354_v35 }
 0x222   :  { %s383_s1 = spop %382 }
 0x223   :  { %v357_v37 = vstv %s383_s1 }
 0x224   :  { %v358_v41 = vsel %vm356_vm11, %v357_v37, 0.0 }
 0x23c   :  { %s385_s26 = spop %384 }
 0x23d   :  { %v360_v40 = vstv %s385_s26 }
 0x23e   :  { %v361_v27 = vsel %vm359_vm10, %v360_v40, 0.0 }
 0x23f   :  { %v362_v44 = vadd.f32 %v361_v27, %v358_v41 }
 0x240   :  { %s387_s27 = spop %386 }
 0x241   :  { %v364_v45 = vstv %s387_s27 }
 0x242   :  { %v365_v47 = vsel %vm363_vm12, %v364_v45, 0.0 }
 0x243   :  { %v366_v26 = vadd.f32 %v365_v47, %v362_v44 }
 0x245   :  { %367 = vst [vmem:[#allocation2] sm:$0x1] %v366_v26 }
 0x246   :  { %453 = shalt.err (!%p450_p4)
}
 0x247   :  { %s454_s7 = scalar_lea.hbm %s790_s4, 16 }
 0x248   :  { %p455_p5 = scmp.ne.s32.totalorder %s790_s4, %s454_s7  ;;  %p458_p6 = scmp.lt.u32.totalorder %s454_s7, %s790_s4 }
 0x24a   :  { %p460_p7 = pnand %p458_p6, %p455_p5 }
 0x24c   :  { %463 = shalt.err (!%p460_p7)
}
 0x24d   :  { %377 = dma.vmem_to_hbm [thread:$0]  %s375_s29, 16, %s790_s4, [#allocation3]  }
 0x24e   :  { %464 = dma.done.wait [#allocation3], 16  }
 0x24f   :  { %465 = vsyncadd [#allocation3], 4294967280 }
 0x250   :  { %381 = vsyncpa [#allocation3], 1 }

</bundles_post_ra>
